<compile_context>
chip_gen: v5e
topology: v5e:2x2
jax: 0.10.0
libtpu: 0.0.40
codegen_flags: <defaults>
</compile_context>

<pallas_src>
import math

import jax
import jax.numpy as jnp
from jax.experimental import pallas as pl
from jax.experimental.pallas import tpu as pltpu

MARGIN1 = 0.4
MARGIN2 = 2.8
EPS = 1e-6
ALPHA = 0.25
GAMMA = 2

_LANE = 128
_SUBLANE = 8
_C_UNROLL_LIMIT = 128  # Python-unroll the channel loop up to this many channels


def _round_down(x, m):
    return (x // m) * m


def _vmem_budget():
    """(target x-block bytes, max tile rows, vmem_limit_bytes) per generation."""
    try:
        cap = pltpu.get_tpu_info().vmem_capacity_bytes
    except Exception:
        cap = 64 * 1024 * 1024  # conservative: assume v7x-sized VMEM
    if cap >= 100 * 1024 * 1024:
        # v5e / v6e: 128 MiB physical VMEM.  Explicit vmem_limit_bytes matters
        # on v5e where the scoped default is only 16 MiB.
        return 6 * 1024 * 1024, 4096, 96 * 1024 * 1024
    # v7x: 64 MiB per TensorCore -> 2 inputs x 2 buffers x 4 MiB + temps << 48 MiB.
    return 4 * 1024 * 1024, 2048, 48 * 1024 * 1024


def _make_kernel(nb, C, ts, s0):
    """Kernel for one (batch-block, spatial-tile) grid cell.

    x1_ref, x2_ref : (nb, C, ts, 128) VMEM, original input dtype
    lab_ref        : (nb, ts, 128)    VMEM, original label dtype
    out_ref        : (1, 1, 8, 128)   VMEM f32 lane-dense partial-sum tile
    """
    needs_row_mask = (s0 % ts) != 0

    def kernel(x1_ref, x2_ref, lab_ref, out_ref):
        if needs_row_mask:
            row = jax.lax.broadcasted_iota(jnp.int32, (ts, _LANE), 0)
            valid = (pl.program_id(1) * ts + row) < s0

        def channel_dist_sq(b):
            # Streaming C reduction: one (ts,128) accumulator, never a
            # (C,ts,128) temporary.  Major-axis reduce -> pure VPU adds.
            def one(c, acc):
                d = jnp.abs(
                    x1_ref[b, c].astype(jnp.float32)
                    - x2_ref[b, c].astype(jnp.float32)
                ) + EPS
                return acc + d * d

            acc0 = jnp.zeros((ts, _LANE), jnp.float32)
            if C <= _C_UNROLL_LIMIT:
                acc = acc0
                for c in range(C):
                    acc = one(c, acc)
                return acc
            return jax.lax.fori_loop(0, C, one, acc0, unroll=8)

        total = jnp.zeros((_SUBLANE, _LANE), jnp.float32)
        for b in range(nb):
            dist = jnp.sqrt(channel_dist_sq(b))          # one EUP sqrt / pixel
            label = lab_ref[b].astype(jnp.float32)       # VPU upcast, free
            mdist_pos = jnp.maximum(dist - MARGIN1, 0.0)
            mdist_neg = jnp.maximum(MARGIN2 - dist, 0.0)
            t = ALPHA * (mdist_pos * mdist_pos)
            t_pow = t * t if GAMMA == 2 else t ** GAMMA  # trace-time constant
            loss = (1.0 - label) * t_pow + label * (mdist_neg * mdist_neg)
            if needs_row_mask:
                # OOB block rows hold unspecified data: select (not multiply)
                # so junk / NaN rows cannot leak into the sum.
                loss = jnp.where(valid, loss, 0.0)
            # Fold ts sublanes into one lane-dense (8,128) vreg of partials
            # (reshape matches the vreg decomposition; leading-axis reduce is
            # pure VPU adds, no XLU).
            total = total + jnp.sum(
                loss.reshape(ts // _SUBLANE, _SUBLANE, _LANE), axis=0
            )
        out_ref[0, 0] = total

    return kernel


def focal_dcontrastive_loss(x1, x2, label):
    """x1, x2: (N, C, H, W); label: (N, H, W). Returns scalar f32 loss."""
    N, C, H, W = x1.shape
    assert x2.shape == (N, C, H, W) and label.shape == (N, H, W)
    HW = H * W

    itemsize = x1.dtype.itemsize
    # Narrow dtypes pack more rows per vreg sublane -> keep ts a multiple of 16
    # for bf16/f16, 32 for int8/fp8.
    sub_mult = _SUBLANE * max(1, 4 // itemsize)

    # When HW % 128 == 0 and gives >= sub_mult rows, the reshape below is a
    # free view (no HBM copy).  Otherwise zero-pad (a copy; only hits small /
    # oddly-shaped images).  Zero padding is loss-neutral because
    # dist_pad = EPS*sqrt(C) << MARGIN1 and the padded label is 0.
    s0 = max(pl.cdiv(HW, _LANE), sub_mult)
    HW_p = s0 * _LANE
    pad = HW_p - HW
    if pad:
        assert MARGIN1 > EPS * math.sqrt(C), (
            "zero-padding is only loss-neutral while MARGIN1 > EPS*sqrt(C)"
        )

    target_block, max_rows, vmem_limit = _vmem_budget()

    # Spatial tile rows: as large as the per-generation budget allows, a
    # multiple of the dtype sublane packing, never larger than the array.
    ts = _round_down(target_block // (C * _LANE * itemsize), sub_mult)
    ts = max(sub_mult, min(ts, max_rows, _round_down(s0, sub_mult)))
    num_tiles = pl.cdiv(s0, ts)

    # Small images (single spatial tile): fold batch into the block so each
    # grid step moves a reasonable chunk, but keep >= 2 grid steps when N >= 2
    # so both v7x TensorCores stay fed.
    nb = 1
    if num_tiles == 1 and N > 1:
        x_block_bytes = C * ts * _LANE * itemsize
        nb_cap = max(1, min(N // 2, target_block // max(x_block_bytes, 1)))
        for d in range(int(nb_cap), 0, -1):
            if N % d == 0:
                nb = d
                break

    # Pass inputs through in their ORIGINAL dtype; the kernel upcasts in VMEM.
    x1f = x1.reshape(N, C, HW)
    x2f = x2.reshape(N, C, HW)
    labf = label.reshape(N, HW)
    if pad:
        x1f = jnp.pad(x1f, ((0, 0), (0, 0), (0, pad)))
        x2f = jnp.pad(x2f, ((0, 0), (0, 0), (0, pad)))
        labf = jnp.pad(labf, ((0, 0), (0, pad)))
    x1p = x1f.reshape(N, C, s0, _LANE)
    x2p = x2f.reshape(N, C, s0, _LANE)
    labp = labf.reshape(N, s0, _LANE)

    partials = pl.pallas_call(
        _make_kernel(nb, C, ts, s0),
        out_shape=jax.ShapeDtypeStruct(
            (N // nb, num_tiles, _SUBLANE, _LANE), jnp.float32
        ),
        grid_spec=pltpu.PrefetchScalarGridSpec(
            num_scalar_prefetch=0,
            grid=(N // nb, num_tiles),
            in_specs=[
                pl.BlockSpec((nb, C, ts, _LANE), lambda n, s: (n, 0, s, 0)),
                pl.BlockSpec((nb, C, ts, _LANE), lambda n, s: (n, 0, s, 0)),
                pl.BlockSpec((nb, ts, _LANE), lambda n, s: (n, s, 0)),
            ],
            out_specs=pl.BlockSpec(
                (1, 1, _SUBLANE, _LANE), lambda n, s: (n, s, 0, 0)
            ),
        ),
        compiler_params=pltpu.CompilerParams(
            dimension_semantics=("parallel", "parallel"),
            vmem_limit_bytes=vmem_limit,
        ),
    )(x1p, x2p, labp)

    # Tiny lane-dense final reduction in XLA; mean over the ORIGINAL N*H*W.
    # (f32 partial sums are hierarchical already; fine up to ~1e8 pixels.)
    return jnp.sum(partials) / jnp.float32(N * HW)


def _reference(x1, x2, label):
    diff = jnp.abs(x1.astype(jnp.float32) - x2.astype(jnp.float32))
    dist_sq = jnp.sum((diff + EPS) ** 2, axis=1)
    dist = jnp.sqrt(dist_sq)
    mdist_pos = jnp.maximum(dist - MARGIN1, 0.0)
    mdist_neg = jnp.maximum(MARGIN2 - dist, 0.0)
    lab = label.astype(jnp.float32)
    loss_pos = (1.0 - lab) * (ALPHA * mdist_pos ** 2) ** GAMMA
    loss_neg = lab * mdist_neg ** 2
    return jnp.mean(loss_pos + loss_neg)


if __name__ == "__main__":
    key = jax.random.PRNGKey(0)

    # Canonical small shape + two extra shapes that exercise the batch-fold
    # and the ragged-last-tile (in-kernel row mask) paths.
    shapes = [
        (2, 4, 16, 16),   # aligned, single tile
        (4, 3, 24, 24),   # lane pad + batch fold (nb > 1)
        (2, 4, 40, 40),   # partial last spatial tile -> in-kernel row mask
    ]
    for idx, (N, C, H, W) in enumerate(shapes):
        k1, k2, k3, key = jax.random.split(jax.random.fold_in(key, idx), 4)
        x1 = jax.random.normal(k1, (N, C, H, W), dtype=jnp.float32)
        x2 = jax.random.normal(k2, (N, C, H, W), dtype=jnp.float32)
        label = jax.random.bernoulli(k3, 0.5, (N, H, W)).astype(jnp.float32)

        loss = jax.block_until_ready(focal_dcontrastive_loss(x1, x2, label))
        ref = jax.block_until_ready(_reference(x1, x2, label))
        assert jnp.allclose(loss, ref, rtol=1e-5, atol=1e-6), (
            (N, C, H, W), loss, ref
        )

    print("KERNEL_OK")
</pallas_src>

<mosaic_0001>
module attributes {stable_mosaic.version = 11 : i64} {
  func.func @kernel(%arg0: i32, %arg1: i32, %arg2: memref<1x4x8x128xf32, #tpu.memory_space<vmem>>, %arg3: memref<1x4x8x128xf32, #tpu.memory_space<vmem>>, %arg4: memref<1x8x128xf32, #tpu.memory_space<vmem>>, %arg5: memref<1x1x8x128xf32, #tpu.memory_space<vmem>>) attributes {dimension_semantics = [#tpu.dimension_semantics<parallel>, #tpu.dimension_semantics<parallel>], iteration_bounds = array<i64: 2, 1>, scalar_prefetch = 0 : i64, scratch_operands = 0 : i64, tpu.core_type = #tpu.core_type<tc>, window_params = [{transform_indices = @transform_0, window_bounds = array<i64: 1, 4, 8, 128>}, {transform_indices = @transform_1, window_bounds = array<i64: 1, 4, 8, 128>}, {transform_indices = @transform_2, window_bounds = array<i64: 1, 8, 128>}, {transform_indices = @transform_3, window_bounds = array<i64: 1, 1, 8, 128>}]} {
    %cst = arith.constant 0.000000e+00 : f32
    %0 = vector.broadcast %cst : f32 to vector<8x128xf32>
    %cst_0 = arith.constant 0.000000e+00 : f32
    %1 = vector.broadcast %cst_0 : f32 to vector<8x128xf32>
    %c0 = arith.constant 0 : index
    %c0_1 = arith.constant 0 : index
    %c0_2 = arith.constant 0 : index
    %c0_3 = arith.constant 0 : index
    %2 = vector.load %arg2[%c0, %c0_1, %c0_2, %c0_3] : memref<1x4x8x128xf32, #tpu.memory_space<vmem>>, vector<1x1x8x128xf32>
    %3 = vector.shape_cast %2 : vector<1x1x8x128xf32> to vector<8x128xf32>
    %c0_4 = arith.constant 0 : index
    %c0_5 = arith.constant 0 : index
    %c0_6 = arith.constant 0 : index
    %c0_7 = arith.constant 0 : index
    %4 = vector.load %arg3[%c0_4, %c0_5, %c0_6, %c0_7] : memref<1x4x8x128xf32, #tpu.memory_space<vmem>>, vector<1x1x8x128xf32>
    %5 = vector.shape_cast %4 : vector<1x1x8x128xf32> to vector<8x128xf32>
    %6 = arith.subf %3, %5 : vector<8x128xf32>
    %7 = math.absf %6 : vector<8x128xf32>
    %cst_8 = arith.constant 9.99999997E-7 : f32
    %8 = vector.broadcast %cst_8 : f32 to vector<8x128xf32>
    %9 = arith.addf %7, %8 : vector<8x128xf32>
    %10 = arith.mulf %9, %9 : vector<8x128xf32>
    %11 = arith.addf %1, %10 : vector<8x128xf32>
    %c0_9 = arith.constant 0 : index
    %c1 = arith.constant 1 : index
    %c0_10 = arith.constant 0 : index
    %c0_11 = arith.constant 0 : index
    %12 = vector.load %arg2[%c0_9, %c1, %c0_10, %c0_11] : memref<1x4x8x128xf32, #tpu.memory_space<vmem>>, vector<1x1x8x128xf32>
    %13 = vector.shape_cast %12 : vector<1x1x8x128xf32> to vector<8x128xf32>
    %c0_12 = arith.constant 0 : index
    %c1_13 = arith.constant 1 : index
    %c0_14 = arith.constant 0 : index
    %c0_15 = arith.constant 0 : index
    %14 = vector.load %arg3[%c0_12, %c1_13, %c0_14, %c0_15] : memref<1x4x8x128xf32, #tpu.memory_space<vmem>>, vector<1x1x8x128xf32>
    %15 = vector.shape_cast %14 : vector<1x1x8x128xf32> to vector<8x128xf32>
    %16 = arith.subf %13, %15 : vector<8x128xf32>
    %17 = math.absf %16 : vector<8x128xf32>
    %cst_16 = arith.constant 9.99999997E-7 : f32
    %18 = vector.broadcast %cst_16 : f32 to vector<8x128xf32>
    %19 = arith.addf %17, %18 : vector<8x128xf32>
    %20 = arith.mulf %19, %19 : vector<8x128xf32>
    %21 = arith.addf %11, %20 : vector<8x128xf32>
    %c0_17 = arith.constant 0 : index
    %c2 = arith.constant 2 : index
    %c0_18 = arith.constant 0 : index
    %c0_19 = arith.constant 0 : index
    %22 = vector.load %arg2[%c0_17, %c2, %c0_18, %c0_19] : memref<1x4x8x128xf32, #tpu.memory_space<vmem>>, vector<1x1x8x128xf32>
    %23 = vector.shape_cast %22 : vector<1x1x8x128xf32> to vector<8x128xf32>
    %c0_20 = arith.constant 0 : index
    %c2_21 = arith.constant 2 : index
    %c0_22 = arith.constant 0 : index
    %c0_23 = arith.constant 0 : index
    %24 = vector.load %arg3[%c0_20, %c2_21, %c0_22, %c0_23] : memref<1x4x8x128xf32, #tpu.memory_space<vmem>>, vector<1x1x8x128xf32>
    %25 = vector.shape_cast %24 : vector<1x1x8x128xf32> to vector<8x128xf32>
    %26 = arith.subf %23, %25 : vector<8x128xf32>
    %27 = math.absf %26 : vector<8x128xf32>
    %cst_24 = arith.constant 9.99999997E-7 : f32
    %28 = vector.broadcast %cst_24 : f32 to vector<8x128xf32>
    %29 = arith.addf %27, %28 : vector<8x128xf32>
    %30 = arith.mulf %29, %29 : vector<8x128xf32>
    %31 = arith.addf %21, %30 : vector<8x128xf32>
    %c0_25 = arith.constant 0 : index
    %c3 = arith.constant 3 : index
    %c0_26 = arith.constant 0 : index
    %c0_27 = arith.constant 0 : index
    %32 = vector.load %arg2[%c0_25, %c3, %c0_26, %c0_27] : memref<1x4x8x128xf32, #tpu.memory_space<vmem>>, vector<1x1x8x128xf32>
    %33 = vector.shape_cast %32 : vector<1x1x8x128xf32> to vector<8x128xf32>
    %c0_28 = arith.constant 0 : index
    %c3_29 = arith.constant 3 : index
    %c0_30 = arith.constant 0 : index
    %c0_31 = arith.constant 0 : index
    %34 = vector.load %arg3[%c0_28, %c3_29, %c0_30, %c0_31] : memref<1x4x8x128xf32, #tpu.memory_space<vmem>>, vector<1x1x8x128xf32>
    %35 = vector.shape_cast %34 : vector<1x1x8x128xf32> to vector<8x128xf32>
    %36 = arith.subf %33, %35 : vector<8x128xf32>
    %37 = math.absf %36 : vector<8x128xf32>
    %cst_32 = arith.constant 9.99999997E-7 : f32
    %38 = vector.broadcast %cst_32 : f32 to vector<8x128xf32>
    %39 = arith.addf %37, %38 : vector<8x128xf32>
    %40 = arith.mulf %39, %39 : vector<8x128xf32>
    %41 = arith.addf %31, %40 : vector<8x128xf32>
    %42 = math.sqrt %41 : vector<8x128xf32>
    %c0_33 = arith.constant 0 : index
    %c0_34 = arith.constant 0 : index
    %c0_35 = arith.constant 0 : index
    %43 = vector.load %arg4[%c0_33, %c0_34, %c0_35] : memref<1x8x128xf32, #tpu.memory_space<vmem>>, vector<1x8x128xf32>
    %44 = vector.shape_cast %43 : vector<1x8x128xf32> to vector<8x128xf32>
    %cst_36 = arith.constant 4.000000e-01 : f32
    %45 = vector.broadcast %cst_36 : f32 to vector<8x128xf32>
    %46 = arith.subf %42, %45 : vector<8x128xf32>
    %cst_37 = arith.constant 0.000000e+00 : f32
    %47 = vector.broadcast %cst_37 : f32 to vector<8x128xf32>
    %48 = arith.maximumf %46, %47 : vector<8x128xf32>
    %cst_38 = arith.constant 2.800000e+00 : f32
    %49 = vector.broadcast %cst_38 : f32 to vector<8x128xf32>
    %50 = arith.subf %49, %42 : vector<8x128xf32>
    %cst_39 = arith.constant 0.000000e+00 : f32
    %51 = vector.broadcast %cst_39 : f32 to vector<8x128xf32>
    %52 = arith.maximumf %50, %51 : vector<8x128xf32>
    %53 = arith.mulf %48, %48 : vector<8x128xf32>
    %cst_40 = arith.constant 2.500000e-01 : f32
    %54 = vector.broadcast %cst_40 : f32 to vector<8x128xf32>
    %55 = arith.mulf %54, %53 : vector<8x128xf32>
    %56 = arith.mulf %55, %55 : vector<8x128xf32>
    %cst_41 = arith.constant 1.000000e+00 : f32
    %57 = vector.broadcast %cst_41 : f32 to vector<8x128xf32>
    %58 = arith.subf %57, %44 : vector<8x128xf32>
    %59 = arith.mulf %58, %56 : vector<8x128xf32>
    %60 = arith.mulf %52, %52 : vector<8x128xf32>
    %61 = arith.mulf %44, %60 : vector<8x128xf32>
    %62 = arith.addf %59, %61 : vector<8x128xf32>
    %63 = vector.shape_cast %62 : vector<8x128xf32> to vector<1x8x128xf32>
    %cst_42 = arith.constant dense<0.000000e+00> : vector<8x128xf32>
    %64 = vector.multi_reduction <add>, %63, %cst_42 [0] : vector<1x8x128xf32> to vector<8x128xf32>
    %65 = arith.addf %0, %64 : vector<8x128xf32>
    %c0_43 = arith.constant 0 : index
    %c0_44 = arith.constant 0 : index
    %c0_45 = arith.constant 0 : index
    %c0_46 = arith.constant 0 : index
    %66 = vector.load %arg5[%c0_43, %c0_44, %c0_45, %c0_46] : memref<1x1x8x128xf32, #tpu.memory_space<vmem>>, vector<1x1x8x128xf32>
    %67 = vector.shape_cast %66 : vector<1x1x8x128xf32> to vector<8x128xf32>
    %68 = vector.shape_cast %65 : vector<8x128xf32> to vector<1x1x8x128xf32>
    tpu.vector_store %arg5[%c0_43, %c0_44, %c0_45, %c0_46], %68 {strides = array<i32>} : memref<1x1x8x128xf32, #tpu.memory_space<vmem>>, vector<1x1x8x128xf32>,
    return
  }
  func.func @transform_0(%arg0: i32, %arg1: i32) -> (i32, i32, i32, i32) {
    %c0_i32 = arith.constant 0 : i32
    %c0_i32_0 = arith.constant 0 : i32
    %c0_i32_1 = arith.constant 0 : i32
    return %arg0, %c0_i32, %arg1, %c0_i32_0 : i32, i32, i32, i32
  }
  func.func @transform_1(%arg0: i32, %arg1: i32) -> (i32, i32, i32, i32) {
    %c0_i32 = arith.constant 0 : i32
    %c0_i32_0 = arith.constant 0 : i32
    %c0_i32_1 = arith.constant 0 : i32
    return %arg0, %c0_i32, %arg1, %c0_i32_0 : i32, i32, i32, i32
  }
  func.func @transform_2(%arg0: i32, %arg1: i32) -> (i32, i32, i32) {
    %c0_i32 = arith.constant 0 : i32
    %c0_i32_0 = arith.constant 0 : i32
    return %arg0, %arg1, %c0_i32 : i32, i32, i32
  }
  func.func @transform_3(%arg0: i32, %arg1: i32) -> (i32, i32, i32, i32) {
    %c0_i32 = arith.constant 0 : i32
    %c0_i32_0 = arith.constant 0 : i32
    %c0_i32_1 = arith.constant 0 : i32
    return %arg0, %arg1, %c0_i32, %c0_i32_0 : i32, i32, i32, i32
  }
}

</mosaic_0001>

<bundles_post_ra>
// kernel: tpu_custom_call.1
= control target key start
LH: loop header
LB: loop body
LE: loop exit
PB: predicated region body
PF: predicated region fallthrough
CT: control target
= control target key end

     0   :  { %s963_s0 = inlined_call_operand.hbm [shape: f32[2,4,8,128], index: 0, kind: input, shape index: {}]   ;;  %s964_s1 = inlined_call_operand.hbm [shape: f32[2,4,8,128], index: 1, kind: input, shape index: {}]   ;;  %s965_s2 = inlined_call_operand.hbm [shape: f32[2,8,128], index: 2, kind: input, shape index: {}]   ;;  %s966_s3 = inlined_call_operand.hbm [shape: f32[2,1,8,128], index: 3, kind: output, shape index: {}]  }
   0x1   :  { %975 = sst [smem:[#allocation19_spill]] %s964_s1 }
   0x2   :  { %8 = vsyncpa [#allocation3], 0 }
   0x3   :  { %10 = vsyncpa [#allocation3 + $0x1], 0 }
   0x4   :  { %11 = vsyncpa [#allocation6], 0 }
   0x5   :  { %13 = vsyncpa [#allocation6 + $0x1], 0 }
   0x6   :  { %14 = vsyncpa [#allocation4], 0 }
   0x7   :  { %16 = vsyncpa [#allocation4 + $0x1], 0  ;;  %s804_s12 = smov 0   ;;  %s806_s13 = smov 0  }
   0x8   :  { %s808_s14 = smov 0   ;;  %s810_s15 = smov 0  }
   0x9   :  { %s812_s16 = smov 0   ;;  %s814_s17 = smov 0  }
   0xa LB: > { %976 = sst [smem:[#allocation12_spill]] %s760_s12  ;;  %s835_s18 = sadd.s32 4294967295, %s780_s17   ;;  %s780_s17 = sphi %s814_s17, %s22_s17   ;;  %s776_s16 = sphi %s812_s16, %s1000_s16   ;;  %s772_s15 = sphi %s810_s15, %s999_s15   ;;  %s768_s14 = sphi %s808_s14, %s995_s14   ;;  %s764_s13 = sphi %s806_s13, %s998_s13   ;;  %s760_s12 = sphi %s804_s12, %s997_s12  }
   0xb   : > { %977 = sst [smem:[#allocation13_spill]] %s768_s14  ;;  %s499_s19 = sadd.s32 4294967294, %s780_s17  }
   0xc   : > { %978 = sst [smem:[#allocation14_spill]] %s780_s17  ;;  %s34_s20 = sadd.s32 1, %s776_s16 }
   0xd   : > { %s43_s21 = sadd.s32 1, %s768_s14  ;;  %p36_p0 = scmp.ge.s32.totalorder %s34_s20, 2 }
   0xe   : > { %p50_p1 = scmp.ne.s32.totalorder %s768_s14, %s764_s13  ;;  %p51_p2 = scmp.eq.s32.totalorder %s780_s17, 0 }
   0xf   : > { %p56_p3 = scmp.ne.s32.totalorder %s764_s13, %s760_s12  ;;  %s1002_s20 = smov (%p36_p0, %s34_s20), 0 }
  0x10   : > { %979 = sst [smem:[#allocation15_spill]] %s1002_s20  ;;  %p847_p4 = por %p51_p2, %p50_p1 }
  0x11   : > { %p57_p5 = scmp.eq.s32.totalorder %s835_s18, 0  ;;  %s38_s23 = ssub.s32 %s776_s16, %s1002_s20 }
  0x12   : > { %p138_p6 = scmp.eq.s32.totalorder %s835_s18, 1  ;;  %p41_p7 = scmp.eq.s32.totalorder %s38_s23, 0 }
  0x13   : > { %p855_p8 = por %p57_p5, %p56_p3  ;;  %p144_p10 = scmp.eq.s32.totalorder %s499_s19, 1 }
  0x14   : > { %p859_p9 = por %p138_p6, %p50_p1  ;;  %p501_p12 = scmp.ge.s32.totalorder %s780_s17, 2 }
  0x15   : > { %s864_s26 = scalar_select %p41_p7, %s768_s14, %s43_s21  }
  0x16   : > { %s982_s25 = scalar_select %p859_p9, 1, 0 }
  0x17   : > { %984 = sst [smem:[#allocation17_spill]] %s864_s26  ;;  %p866_p11 = por %p144_p10, %p56_p3 }
  0x18   : > { %983 = sst [smem:[#allocation16_spill]] %s982_s25  ;;  %p550_p13 = scmp.lt.s32.totalorder %s780_s17, 2 }
  0x19   : > { %s985_s27 = scalar_select %p866_p11, 1, 0 }
  0x1a   : > { %s873_s28 = sand.u32 1, %s768_s14   ;;  %s526_s30 = sshll.u32 %s776_s16, 5 }
  0x1b   : > { %986 = sst [smem:[#allocation18_spill]] %s985_s27  ;;  %s502_s29 = sshll.u32 %s873_s28, 5 }
  0x1c   : > { %p879_p0 = pnand %p550_p13, %p847_p4  ;;  %s187_s5 = sand.u32 1, %s780_s17  }
  0x1d   : > { %s988_s1 = sld [smem:[#allocation19_spill]]  ;;  %s191_s10 = scalar_lea.vmem [#allocation5], %s502_s29 }
  0x1e   : > { %s200_s11 = sshll.u32 %s191_s10, 4  ;;  %s188_s19 = scalar_lea.sflag [#allocation6], %s187_s5  ;;  %s201_s11 = int_to_ptr.vmem [resolvable:$true] %s200_s11 }
  0x1f   : > { %s782_s21 = smov 128   ;;  %s783_s22 = smov 8  }
  0x20   : > { %p510_p1 = scmp.ge.s32.totalorder %s780_s17, 1  ;;  %p228_p2 = scmp.lt.s32.totalorder %s780_s17, 3 }
  0x21   : > { %s165_s5 = scalar_lea.sflag [#allocation3], %s873_s28 }
  0x22   : > { %p891_p3 = pnand %p510_p1, %p228_p2 }
  0x23   : > { %s197_s8 = scalar_lea.hbm %s988_s1, %s526_s30  ;;  %s168_s1 = scalar_lea.vmem [#allocation2], %s502_s29 }
  0x24   : > { %s198_s9 = sshll.u32 %s197_s8, 4  ;;  %s174_s8 = scalar_lea.hbm %s963_s0, %s526_s30  ;;  %s199_s9 = int_to_ptr.hbm [resolvable:$true] %s198_s9 }
  0x25   : > { %542 = dma.hbm_to_vmem [thread:$0]  (!%p879_p0), %s199_s9, 512, %s201_s11, %s188_s19, %s782_s21, %s782_s21, %s783_s22  }
  0x26   : > { %s175_s10 = sshll.u32 %s174_s8, 4  ;;  %s177_s20 = sshll.u32 %s168_s1, 4  ;;  %s176_s10 = int_to_ptr.hbm [resolvable:$true] %s175_s10  ;;  %s178_s20 = int_to_ptr.vmem [resolvable:$true] %s177_s20 }
  0x27   : > { %539 = dma.hbm_to_vmem [thread:$0]  (!%p879_p0), %s176_s10, 512, %s178_s20, %s165_s5, %s782_s21, %s782_s21, %s783_s22  }
  0x28   : > { %s508_s9 = sshll.u32 %s873_s28, 3  ;;  %s509_s11 = sshll.u32 %s776_s16, 3 }
  0x29   : > { %s219_s17 = scalar_lea.hbm %s965_s2, %s509_s11  ;;  %s214_s12 = scalar_lea.vmem [#allocation7], %s508_s9 }
  0x2a   : > { %s221_s27 = sshll.u32 %s219_s17, 4  ;;  %s223_s25 = sshll.u32 %s214_s12, 4  ;;  %s222_s27 = int_to_ptr.hbm [resolvable:$true] %s221_s27  ;;  %s224_s25 = int_to_ptr.vmem [resolvable:$true] %s223_s25 }
  0x2b   : > { %545 = dma.hbm_to_vmem [thread:$0]  (!%p879_p0), %s222_s27, 128, %s224_s25, %s188_s19  }
  0x2c   : > { %232 = sbr.rel (%p891_p3) target bundleno = 107 (0x6b), region = 32  ;;  %s911_s1 = sand.u32 (!%p891_p3), 1, %s764_s13  }
  0x2d   : > { %s511_s20 = sshll.u32 (!%p891_p3), %s911_s1, 5  ;;  %s235_s28 = scalar_lea.sflag (!%p891_p3), [#allocation3], %s911_s1 }
  0x2e   : > { %s238_s14 = scalar_lea.vmem (!%p891_p3), [#allocation2], %s511_s20 }
  0x31   : > { %747 = dma.done.wait (%p855_p8), %s235_s28, 512  }
  0x32   : > { %749 = vsyncadd (%p855_p8), %s235_s28, 4294966784  ;;  %s244_s12 = sand.u32 1, %s835_s18   ;;  %s248_s25 = scalar_lea.vmem [#allocation5], %s511_s20 }
  0x33   : > { %s245_s17 = scalar_lea.sflag [#allocation6], %s244_s12 }
  0x34   : > { %751 = dma.done.wait (%p855_p8), %s245_s17, 640  }
  0x35   : > { %753 = vsyncadd (%p855_p8), %s245_s17, 4294966656  ;;  %v292_v0 = vld [vmem:[%s238_s14] sm:$0xff]  ;;  %v515_v2 = vld [vmem:[%s238_s14 + $0x8] sm:$0xff]  ;;  %s513_s18 = sshll.u32 %s911_s1, 3  ;;  %s523_s26 = sshll.u32 %s772_s15, 3 }
  0x36   : > { %v293_v1 = vld [vmem:[%s248_s25] sm:$0xff]  ;;  %v516_v4 = vld [vmem:[%s248_s25 + $0x8] sm:$0xff]  ;;  %v517_v5 = vld [vmem:[%s238_s14 + $0x10] sm:$0xff]  ;;  %s258_s24 = scalar_lea.vmem [#allocation7], %s513_s18  ;;  %s366_s30 = scalar_lea.hbm %s966_s3, %s523_s26 }
  0x37   : > { %v294_v3 = vsub.f32 %v292_v0, %v293_v1  ;;  %v518_v6 = vld [vmem:[%s248_s25 + $0x10] sm:$0xff]  ;;  %v303_v7 = vsub.f32 %v515_v2, %v516_v4  ;;  %v519_v9 = vld [vmem:[%s238_s14 + $0x18] sm:$0xff]  ;;  %v338_v41 = vld [vmem:[%s258_s24] sm:$0xff]  ;;  %s291_s19 = scalar_lea.vmem [#allocation8], %s513_s18  ;;  %s370_s22 = sshll.u32 %s366_s30, 4  ;;  %s371_s22 = int_to_ptr.hbm [resolvable:$true] %s370_s22 }
  0x38   : > { %v312_v8 = vsub.f32 %v517_v5, %v518_v6  ;;  %v520_v10 = vld [vmem:[%s248_s25 + $0x18] sm:$0xff]  ;;  %v346_v45 = vsub.f32 1.0, %v338_v41  ;;  %s368_s21 = sshll.u32 %s291_s19, 4  ;;  %s355_s15 = scalar_lea.sflag [#allocation4], %s911_s1  ;;  %s369_s21 = int_to_ptr.vmem [resolvable:$true] %s368_s21 }
  0x39   : > { %v295_v11 = vand.u32 2147483647, %v294_v3  ;;  %v321_v12 = vsub.f32 %v519_v9, %v520_v10  ;;  %v304_v13 = vand.u32 2147483647, %v303_v7  ;;  %s708_s23 = sshra.s32 %s371_s22, 4  ;;  %s714_s10 = scalar_lea.hbm %s966_s3, 16  ;;  %s709_s23 = int_to_ptr.hbm [resolvable:$true] %s708_s23 }
  0x3a   : > { %v313_v14 = vand.u32 2147483647, %v312_v8  ;;  %s710_s6 = scalar_lea.hbm %s709_s23, 8  ;;  %p715_p7 = scmp.lt.s32.totalorder %s709_s23, %s966_s3 }
  0x3b   : > { %v296_v15 = vadd.f32 1e-06, %v295_v11  ;;  %v322_v16 = vand.u32 2147483647, %v321_v12  ;;  %v305_v17 = vadd.f32 1e-06, %v304_v13  ;;  %p711_p4 = scmp.ne.s32.totalorder %s709_s23, %s710_s6  ;;  %p716_p8 = scmp.lt.s32.totalorder %s714_s10, %s710_s6 }
  0x3c   : > { %v314_v18 = vadd.f32 1e-06, %v313_v14 }
  0x3d   : > { %v297_v19 = vmul.f32 %v296_v15, %v296_v15  ;;  %v323_v20 = vadd.f32 1e-06, %v322_v16  ;;  %v306_v21 = vmul.f32 %v305_v17, %v305_v17  ;;  %p712_p5 = pnand %p711_p4, %p859_p9  ;;  %p717_p10 = por %p716_p8, %p715_p7 }
  0x3e   : > { %v315_v22 = vmul.f32 %v314_v18, %v314_v18 }
  0x3f   : > { %v307_v23 = vadd.f32 %v306_v21, %v297_v19  ;;  %v324_v24 = vmul.f32 %v323_v20, %v323_v20  ;;  %p713_p6 = pneg %p712_p5 }
  0x41   : > { %v316_v25 = vadd.f32 %v315_v22, %v307_v23  ;;  %p718_p13 = pnand %p717_p10, %p713_p6 }
  0x43   : > { %v325_v26 = vadd.f32 %v324_v24, %v316_v25 }
  0x45   : > { %602 = vrsqrt.f32 %v325_v26  ;;  %vm333_vm0 = vcmp.eq.f32.partialorder %v325_v26, inf  ;;  %v336_v33 = vand.u32 2147483648, %v325_v26  ;;  %vm335_vm1 = vcmp.eq.f32.partialorder %v325_v26, 0.0 }
  0x4b   : > { %v603_v27 = vpop.eup %602 }
  0x4c   : > { %v327_v28 = vmul.f32 %v603_v27, %v325_v26 }
  0x4e   : > { %v328_v29 = vmul.f32 %v603_v27, %v327_v28 }
  0x50   : > { %v329_v30 = vmul.f32 0.5, %v328_v29 }
  0x52   : > { %v330_v31 = vsub.f32 1.5, %v329_v30 }
  0x54   : > { %v331_v32 = vmul.f32 %v603_v27, %v330_v31 }
  0x56   : > { %v332_v34 = vmul.f32 %v331_v32, %v325_v26 }
  0x58   : > { %v334_v35 = vsel %vm333_vm0, %v325_v26, %v332_v34 }
  0x59   : > { %v337_v36 = vsel %vm335_vm1, %v336_v33, %v334_v35 }
  0x5a   : > { %v521_v37 = vadd.f32 -0.4, %v337_v36  ;;  %v341_v38 = vsub.f32 2.8, %v337_v36 }
  0x5c   : > { %v340_v39 = vmax.f32 %v521_v37, 0.0  ;;  %v342_v40 = vmax.f32 %v341_v38, 0.0 }
  0x5e   : > { %v343_v42 = vmul.f32 %v340_v39, %v340_v39  ;;  %v348_v43 = vmul.f32 %v342_v40, %v342_v40 }
  0x60   : > { %v344_v44 = vmul.f32 0.25, %v343_v42  ;;  %v349_v47 = vmul.f32 %v348_v43, %v338_v41 }
  0x62   : > { %v345_v46 = vmul.f32 %v344_v44, %v344_v44 }
  0x64   : > { %v347_v48 = vmul.f32 %v346_v45, %v345_v46 }
  0x66   : > { %v350_v49 = vadd.f32 %v349_v47, %v347_v48 }
  0x68   : > { %353 = vst [vmem:[%s291_s19] sm:$0xff] %v350_v49 }
  0x69   : > { %721 = shalt.err (!%p718_p13)
}
  0x6a   : > { %534 = dma.vmem_to_hbm [thread:$0]  (%p859_p9), %s369_s21, 128, %s371_s22, %s355_s15  }
  0x6b PF: > { %s991_s11 = sld [smem:[#allocation12_spill]]  ;;  %p547_p0 = pnand %p501_p12, %p866_p11 }
  0x6c   : > { %s993_s20 = sld [smem:[#allocation14_spill]] }
  0x6d   : > { %p548_p1 = pneg %p547_p0 }
  0x71   : > { %s382_s28 = sand.u32 1, %s991_s11  }
  0x72   : > { %s383_s14 = scalar_lea.sflag [#allocation4], %s382_s28 }
  0x73   : > { %755 = dma.done.wait (%p548_p1), %s383_s14, 128  }
  0x74   : > { %757 = vsyncadd (%p548_p1), %s383_s14, 4294967168  ;;  %s22_s17 = sadd.s32 1, %s993_s20   ;;  %s994_s25 = sld [smem:[#allocation13_spill]] }
  0x75   : > { %p19_p2 = scmp.ge.s32.totalorder %s22_s17, 4   ;;  %s995_s14 = sld [smem:[#allocation17_spill]] }
  0x76   : > { %s996_s18 = sld [smem:[#allocation15_spill]]  ;;  %s997_s12 = smov %s764_s13 }
  0x77   : > { %s999_s15 = smov %s776_s16 }
  0x78   :  { %21 = sbr.rel (!%p19_p2) target bundleno = 10 (0xa), region = 107 }
  0x7a   : > { %s998_s13 = smov %s994_s25 }
  0x7c   : > { %s1000_s16 = smov %s996_s18 }
  0x7d   :  { %389 = vsyncpa [#allocation3], 1 }
  0x7e   :  { %391 = vsyncpa [#allocation3 + $0x1], 1 }
  0x7f   :  { %392 = vsyncpa [#allocation6], 1 }
  0x80   :  { %394 = vsyncpa [#allocation6 + $0x1], 1 }
  0x81   :  { %395 = vsyncpa [#allocation4], 1 }
  0x82   :  { %397 = vsyncpa [#allocation4 + $0x1], 1 }

</bundles_post_ra>
